<compile_context>
chip_gen: v6e
topology: v6e:2x2x1
jax: 0.10.0
libtpu: 0.0.40
codegen_flags: <defaults>
</compile_context>

<pallas_src>
import functools

import jax
import jax.numpy as jnp
from jax.experimental import pallas as pl
from jax.experimental.pallas import tpu as pltpu


def _layernorm_kernel(x_ref, w_ref, b_ref, o_ref, *, eps, dim):
    # x_ref: (tile_m, D) native dtype; w_ref/b_ref: (1, D) already f32 (hoisted cast).
    x = x_ref[...].astype(jnp.float32)
    # Single sweep over the lane axis: both reductions depend only on x.
    s1 = jnp.sum(x, axis=-1, keepdims=True)
    s2 = jnp.sum(x * x, axis=-1, keepdims=True)
    mean = s1 * jnp.float32(1.0 / dim)
    # Unbiased variance (ddof = 1): (sum(x^2) - sum(x)^2 / D) / (D - 1),
    # matching torch.var(dim=-1, unbiased=True) in the module.
    var = (s2 - s1 * mean) * jnp.float32(1.0 / (dim - 1))
    var = jnp.maximum(var, jnp.float32(0.0))  # guard tiny negatives from f32 cancellation
    inv = jax.lax.rsqrt(var + jnp.float32(eps))
    out = (x - mean) * inv * w_ref[...] + b_ref[...]
    o_ref[...] = out.astype(o_ref.dtype)


def _tpu_tiling_params():
    """Generation-aware (target_tile_bytes, vmem_cap, want_min_tiles)."""
    # Conservative defaults assume a v7x-class part: 64 MiB VMEM/TC, 2 TensorCores.
    target_tile_bytes = 4 * 1024 * 1024
    vmem_cap = 48 * 1024 * 1024
    want_min_tiles = 2
    try:
        info = pltpu.get_tpu_info()
        if info.vmem_capacity_bytes >= 96 * 1024 * 1024:
            # v5e / v6e: 128 MiB VMEM, single TensorCore -> bigger tiles, fewer grid steps.
            target_tile_bytes = 8 * 1024 * 1024
            vmem_cap = 64 * 1024 * 1024
            want_min_tiles = 1
    except Exception:  # pragma: no cover - keep conservative defaults if query fails
        pass
    return target_tile_bytes, vmem_cap, want_min_tiles


def _pick_tile_m(m, d, itemsize, target_tile_bytes, vmem_cap, want_min_tiles):
    """Byte-sized row tile that fits (double-buffered I/O + f32 temps) in the VMEM cap."""
    sublane = 16 if itemsize == 2 else 8
    row_bytes_io = d * itemsize
    row_bytes_f32 = d * 4

    def footprint(tm):
        # 2x double-buffered input tiles + 2x double-buffered output tiles (native dtype)
        # + ~3 f32 in-kernel temporaries (upcast x, centered x, scaled out) + resident w/b.
        return 4 * tm * row_bytes_io + 3 * tm * row_bytes_f32 + 2 * row_bytes_f32

    tile_m = max(sublane, target_tile_bytes // max(1, row_bytes_io))
    tile_m = (tile_m // sublane) * sublane
    m_rounded = ((m + sublane - 1) // sublane) * sublane
    tile_m = max(sublane, min(tile_m, m_rounded))

    # Shrink until the dtype-aware VMEM footprint fits the generation cap.
    while tile_m > sublane and footprint(tile_m) > vmem_cap:
        tile_m = max(sublane, ((tile_m // 2) // sublane) * sublane)

    # On a 2-TensorCore part, make sure there are >= 2 row tiles so the "parallel"
    # grid axis actually splits work across both cores.
    if want_min_tiles >= 2 and m > sublane and pl.cdiv(m, tile_m) < 2:
        half = (m + 1) // 2
        tile_m = max(sublane, ((half + sublane - 1) // sublane) * sublane)

    return tile_m, footprint(tile_m)


def layer_norm(x, w, b, eps=1e-5):
    """LayerNorm over the last dim with unbiased variance (matches the PyTorch module)."""
    B, S, D = x.shape
    assert D > 1, "unbiased variance needs input_dim > 1 (torch.var would give NaN)"
    M = B * S
    itemsize = jnp.dtype(x.dtype).itemsize
    x2 = x.reshape(M, D)  # metadata-only reshape; no HBM traffic

    target_tile_bytes, vmem_cap, want_min_tiles = _tpu_tiling_params()
    tile_m, footprint = _pick_tile_m(M, D, itemsize, target_tile_bytes, vmem_cap, want_min_tiles)
    n_tiles = pl.cdiv(M, tile_m)  # no padding: Pallas masks the tail block's stores

    # Hoist gamma/beta cast out of the per-iteration kernel body; they stay VMEM-resident.
    w2 = w.astype(jnp.float32).reshape(1, D)
    b2 = b.astype(jnp.float32).reshape(1, D)

    kernel = functools.partial(_layernorm_kernel, eps=eps, dim=D)

    # Dtype-aware scoped-VMEM limit with headroom; never above the generation cap.
    vmem_limit = int(min(vmem_cap, max(32 * 1024 * 1024, footprint + footprint // 2)))

    out = pl.pallas_call(
        kernel,
        out_shape=jax.ShapeDtypeStruct((M, D), x.dtype),
        grid_spec=pltpu.PrefetchScalarGridSpec(
            num_scalar_prefetch=0,
            grid=(n_tiles,),
            in_specs=[
                pl.BlockSpec((tile_m, D), lambda i: (i, 0)),
                pl.BlockSpec((1, D), lambda i: (0, 0)),
                pl.BlockSpec((1, D), lambda i: (0, 0)),
            ],
            out_specs=pl.BlockSpec((tile_m, D), lambda i: (i, 0)),
        ),
        compiler_params=pltpu.CompilerParams(
            dimension_semantics=("parallel",),  # independent row tiles -> megacore-splittable
            vmem_limit_bytes=vmem_limit,
        ),
    )(x2, w2, b2)

    return out.reshape(B, S, D)


if __name__ == "__main__":
    def ref_layernorm(x, w, b, eps=1e-5):
        D = x.shape[-1]
        mean = jnp.mean(x, axis=-1, keepdims=True)
        var = jnp.sum((x - mean) ** 2, axis=-1, keepdims=True) / (D - 1)  # unbiased, as in the module
        return (x - mean) / jnp.sqrt(var + eps) * w + b

    key = jax.random.PRNGKey(0)
    k1, k2 = jax.random.split(key)

    # Case 1: lane-dense feature dim (multiple of 128), params = ones/zeros like the module init.
    B, S, D = 2, 8, 128
    x = jax.random.normal(k1, (B, S, D), dtype=jnp.float32)
    w = jnp.ones((D,), dtype=jnp.float32)
    b = jnp.zeros((D,), dtype=jnp.float32)
    y = layer_norm(x, w, b, eps=1e-5)
    jax.block_until_ready(y)
    assert jnp.allclose(y, ref_layernorm(x, w, b, 1e-5), atol=1e-5, rtol=1e-5), "mismatch (D=128)"

    # Case 2: narrow D and ragged M (B*S = 21, not a tile multiple) exercising masked tail writes,
    # non-trivial affine params.
    B2, S2, D2 = 3, 7, 32
    x2 = jax.random.normal(k2, (B2, S2, D2), dtype=jnp.float32)
    w2 = jax.random.normal(jax.random.PRNGKey(1), (D2,), dtype=jnp.float32)
    b2 = jax.random.normal(jax.random.PRNGKey(2), (D2,), dtype=jnp.float32)
    y2 = layer_norm(x2, w2, b2, eps=1e-5)
    jax.block_until_ready(y2)
    assert jnp.allclose(y2, ref_layernorm(x2, w2, b2, 1e-5), atol=1e-5, rtol=1e-5), "mismatch (ragged)"

    print("KERNEL_OK")
</pallas_src>

<mosaic_0001>
module attributes {stable_mosaic.version = 11 : i64} {
  func.func @_layernorm_kernel(%arg0: i32, %arg1: memref<8x128xf32, #tpu.memory_space<vmem>>, %arg2: memref<1x128xf32, #tpu.memory_space<vmem>>, %arg3: memref<1x128xf32, #tpu.memory_space<vmem>>, %arg4: memref<8x128xf32, #tpu.memory_space<vmem>>) attributes {dimension_semantics = [#tpu.dimension_semantics<parallel>], iteration_bounds = array<i64: 2>, scalar_prefetch = 0 : i64, scratch_operands = 0 : i64, tpu.core_type = #tpu.core_type<tc>, window_params = [{transform_indices = @transform_0, window_bounds = array<i64: 8, 128>}, {pipeline_mode = #tpu.pipeline_mode<synchronous>, transform_indices = @transform_1, window_bounds = array<i64: 1, 128>}, {pipeline_mode = #tpu.pipeline_mode<synchronous>, transform_indices = @transform_2, window_bounds = array<i64: 1, 128>}, {transform_indices = @transform_3, window_bounds = array<i64: 8, 128>}]} {
    %c0 = arith.constant 0 : index
    %c0_0 = arith.constant 0 : index
    %0 = vector.load %arg1[%c0, %c0_0] : memref<8x128xf32, #tpu.memory_space<vmem>>, vector<8x128xf32>
    %cst = arith.constant dense<0.000000e+00> : vector<8xf32>
    %1 = vector.multi_reduction <add>, %0, %cst [1] : vector<8x128xf32> to vector<8xf32>
    %2 = vector.shape_cast %1 : vector<8xf32> to vector<8x1xf32>
    %3 = arith.mulf %0, %0 : vector<8x128xf32>
    %cst_1 = arith.constant dense<0.000000e+00> : vector<8xf32>
    %4 = vector.multi_reduction <add>, %3, %cst_1 [1] : vector<8x128xf32> to vector<8xf32>
    %5 = vector.shape_cast %4 : vector<8xf32> to vector<8x1xf32>
    %cst_2 = arith.constant 7.812500e-03 : f32
    %6 = vector.broadcast %cst_2 : f32 to vector<8x1xf32>
    %7 = arith.mulf %2, %6 : vector<8x1xf32>
    %8 = arith.mulf %2, %7 : vector<8x1xf32>
    %9 = arith.subf %5, %8 : vector<8x1xf32>
    %cst_3 = arith.constant 0.00787401571 : f32
    %10 = vector.broadcast %cst_3 : f32 to vector<8x1xf32>
    %11 = arith.mulf %9, %10 : vector<8x1xf32>
    %cst_4 = arith.constant 0.000000e+00 : f32
    %12 = vector.broadcast %cst_4 : f32 to vector<8x1xf32>
    %13 = arith.maximumf %11, %12 : vector<8x1xf32>
    %cst_5 = arith.constant 9.99999974E-6 : f32
    %14 = vector.broadcast %cst_5 : f32 to vector<8x1xf32>
    %15 = arith.addf %13, %14 : vector<8x1xf32>
    %16 = math.rsqrt %15 : vector<8x1xf32>
    %17 = vector.broadcast %7 : vector<8x1xf32> to vector<8x128xf32>
    %18 = arith.subf %0, %17 : vector<8x128xf32>
    %19 = vector.broadcast %16 : vector<8x1xf32> to vector<8x128xf32>
    %20 = arith.mulf %18, %19 : vector<8x128xf32>
    %c0_6 = arith.constant 0 : index
    %c0_7 = arith.constant 0 : index
    %21 = vector.load %arg2[%c0_6, %c0_7] : memref<1x128xf32, #tpu.memory_space<vmem>>, vector<1x128xf32>
    %22 = vector.broadcast %21 : vector<1x128xf32> to vector<8x128xf32>
    %23 = arith.mulf %20, %22 : vector<8x128xf32>
    %c0_8 = arith.constant 0 : index
    %c0_9 = arith.constant 0 : index
    %24 = vector.load %arg3[%c0_8, %c0_9] : memref<1x128xf32, #tpu.memory_space<vmem>>, vector<1x128xf32>
    %25 = vector.broadcast %24 : vector<1x128xf32> to vector<8x128xf32>
    %26 = arith.addf %23, %25 : vector<8x128xf32>
    %c0_10 = arith.constant 0 : index
    %c0_11 = arith.constant 0 : index
    %27 = vector.load %arg4[%c0_10, %c0_11] : memref<8x128xf32, #tpu.memory_space<vmem>>, vector<8x128xf32>
    tpu.vector_store %arg4[%c0_10, %c0_11], %26 {strides = array<i32>} : memref<8x128xf32, #tpu.memory_space<vmem>>, vector<8x128xf32>,
    return
  }
  func.func @transform_0(%arg0: i32) -> (i32, i32) {
    %c0_i32 = arith.constant 0 : i32
    %c0_i32_0 = arith.constant 0 : i32
    return %arg0, %c0_i32 : i32, i32
  }
  func.func @transform_1(%arg0: i32) -> (i32, i32) {
    %c0_i32 = arith.constant 0 : i32
    %c0_i32_0 = arith.constant 0 : i32
    %c0_i32_1 = arith.constant 0 : i32
    return %c0_i32, %c0_i32_0 : i32, i32
  }
  func.func @transform_2(%arg0: i32) -> (i32, i32) {
    %c0_i32 = arith.constant 0 : i32
    %c0_i32_0 = arith.constant 0 : i32
    %c0_i32_1 = arith.constant 0 : i32
    return %c0_i32, %c0_i32_0 : i32, i32
  }
  func.func @transform_3(%arg0: i32) -> (i32, i32) {
    %c0_i32 = arith.constant 0 : i32
    %c0_i32_0 = arith.constant 0 : i32
    return %arg0, %c0_i32 : i32, i32
  }
}

</mosaic_0001>

<bundles_post_ra>
// kernel: tpu_custom_call.1
= control target key start
LH: loop header
LB: loop body
LE: loop exit
PB: predicated region body
PF: predicated region fallthrough
CT: control target
= control target key end

     0   :  { %8 = vsyncpa [#allocation3], 0  ;;  %s627_s0 = inlined_call_operand.hbm [shape: f32[16,128], index: 0, kind: input, shape index: {}]   ;;  %s628_s1 = inlined_call_operand.vmem [shape: f32[1,128], index: 1, kind: input, shape index: {}]   ;;  %s629_s2 = inlined_call_operand.vmem [shape: f32[1,128], index: 2, kind: input, shape index: {}]   ;;  %s630_s3 = inlined_call_operand.hbm [shape: f32[16,128], index: 3, kind: output, shape index: {}]  }
   0x1   :  { %10 = vsyncpa [#allocation3 + $0x1], 0 }
   0x2   :  { %11 = vsyncpa [#allocation4], 0 }
   0x3   :  { %13 = vsyncpa [#allocation4 + $0x1], 0  ;;  %s480_s12 = smov 0   ;;  %s482_s13 = smov 0  }
   0x4   :  { %s484_s14 = smov 0   ;;  %s486_s15 = smov 0  }
   0x5 LB: > { %s501_s16 = sadd.s32 4294967295, %s456_s15   ;;  %s302_s17 = sadd.s32 4294967294, %s456_s15   ;;  %s456_s15 = sphi %s486_s15, %s647_s15   ;;  %s452_s14 = sphi %s484_s14, %s646_s14   ;;  %s448_s13 = sphi %s482_s13, %s645_s13   ;;  %s444_s12 = sphi %s480_s12, %s644_s12  }
   0x6   : > { %s505_s18 = sadd.s32 1, %s456_s15   ;;  %s26_s19 = sadd.s32 1, %s452_s14 }
   0x7   : > { %s23_s20 = ssub.s32 %s456_s15, %s505_s18  ;;  %p33_p0 = scmp.ne.s32.totalorder %s452_s14, %s448_s13 }
   0x8   : > { %p24_p1 = scmp.eq.s32.totalorder %s23_s20, 0  ;;  %p34_p2 = scmp.eq.s32.totalorder %s456_s15, 0 }
   0x9   : > { %p39_p3 = scmp.ne.s32.totalorder %s448_s13, %s444_s12  ;;  %p40_p4 = scmp.eq.s32.totalorder %s501_s16, 0 }
   0xa   : > { %s517_s21 = scalar_select %p24_p1, %s452_s14, %s26_s19  }
   0xb   : > { %p519_p5 = por %p34_p2, %p33_p0  ;;  %p523_p6 = por %p40_p4, %p39_p3 }
   0xc   : > { %p105_p7 = scmp.eq.s32.totalorder %s501_s16, 1  ;;  %p111_p8 = scmp.eq.s32.totalorder %s302_s17, 1 }
   0xd   : > { %s634_s23 = scalar_select %p523_p6, 1, 0 }
   0xe   : > { %p328_p10 = scmp.lt.s32.totalorder %s456_s15, 2  ;;  %p530_p11 = por %p105_p7, %p33_p0 }
   0xf   : > { %p534_p12 = por %p111_p8, %p39_p3  ;;  %s137_s26 = sand.u32 1, %s452_s14  }
  0x10   : > { %s635_s24 = scalar_select %p530_p11, 1, 0 }
  0x11   : > { %s636_s25 = scalar_select %p534_p12, 1, 0 }
  0x12   : > { %s306_s27 = sshll.u32 %s456_s15, 7  ;;  %s305_s28 = sshll.u32 %s137_s26, 3 }
  0x13   : > { %s543_s4 = scalar_lea.hbm %s627_s0, %s306_s27  ;;  %s141_s5 = scalar_lea.vmem [#allocation2], %s305_s28 }
  0x14   : > { %s148_s6 = sshll.u32 %s141_s5, 4  ;;  %p547_p13 = pnand %p328_p10, %p519_p5  ;;  %s551_s6 = int_to_ptr.vmem [resolvable:$true] %s148_s6 }
  0x15   : > { %s138_s8 = scalar_lea.sflag [#allocation3], %s137_s26  ;;  %s364_s9 = scalar_lea.hbm %s543_s4, 128 }
  0x16   : > { %p365_p2 = scmp.ne.s32.totalorder %s543_s4, %s364_s9  ;;  %p366_p3 = pneg %p547_p13 }
  0x17   : > { %s369_s17 = scalar_lea.hbm %s627_s0, 256  ;;  %p370_p5 = scmp.lt.s32.totalorder %s543_s4, %s627_s0 }
  0x18   : > { %p367_p4 = pnand %p366_p3, %p365_p2  ;;  %p371_p8 = scmp.lt.s32.totalorder %s369_s17, %s364_s9 }
  0x1a   : > { %p368_p7 = pneg %p367_p4  ;;  %p372_p10 = por %p371_p8, %p370_p5 }
  0x1c   : > { %p373_p9 = pnand %p372_p10, %p368_p7 }
  0x1e   : > { %376 = shalt.err (!%p373_p9)
}
  0x1f   : > { %s377_s22 = scalar_lea.vmem %s551_s6, 128  ;;  %s458_s26 = smov [#allocation2]  }
  0x20   : > { %p378_p0 = scmp.ne.s32.totalorder %s551_s6, %s377_s22  ;;  %s382_s27 = sshll.u32 %s458_s26, 4  ;;  %s383_s27 = int_to_ptr.vmem [resolvable:$false] %s382_s27 }
  0x21   : > { %s384_s28 = scalar_lea.vmem %s383_s27, 256  ;;  %p385_p4 = scmp.lt.s32.totalorder %s551_s6, %s383_s27 }
  0x22   : > { %p380_p1 = pnand %p378_p0, %p366_p3  ;;  %p386_p12 = scmp.lt.s32.totalorder %s384_s28, %s377_s22 }
  0x24   : > { %p381_p2 = pneg %p380_p1  ;;  %p387_p11 = por %p386_p12, %p385_p4 }
  0x26   : > { %p388_p6 = pnand %p387_p11, %p381_p2 }
  0x28   : > { %391 = shalt.err (!%p388_p6)
}
  0x29   : > { %323 = dma.hbm_to_vmem [thread:$0]  (!%p547_p13), %s543_s4, 128, %s551_s6, %s138_s8  }
  0x2a   : > { %p638_p9 = scmp.lt.s32.totalorder %s456_s15, 3  ;;  %p639_p7 = scmp.ge.s32.totalorder %s456_s15, 1 }
  0x2c   : > { %p154_p0 = pnand %p639_p7, %p638_p9 }
  0x2d   : > { %s578_s29 = sand.u32 (!%p154_p0), 1, %s448_s13   ;;  %p640_p6 = scmp.ne.s32.totalorder (!%p154_p0), %s634_s23, 0 }
  0x2e   : > { %157 = sbr.rel (%p154_p0) target bundleno = 236 (0xec), region = 32  ;;  %s308_s30 = sshll.u32 (!%p154_p0), %s578_s29, 3 }
  0x2f   : > { %s160_s5 = scalar_lea.sflag (!%p154_p0), [#allocation3], %s578_s29  ;;  %s163_s9 = scalar_lea.vmem (!%p154_p0), [#allocation2], %s308_s30 }
  0x33   : > { %435 = dma.done.wait (%p640_p6), %s160_s5, 128  }
  0x34   : > { %437 = vsyncadd (%p640_p6), %s160_s5, 4294967168  ;;  %v186_v0 = vld [vmem:[%s163_s9] sm:$0xff]  ;;  %s313_s8 = sshll.u32 %s501_s16, 7  ;;  %s185_s10 = scalar_lea.vmem [#allocation5], %s308_s30 }
  0x35   : > { %187 = vadd.xlane.f32.xlu0 %v186_v0  ;;  %v189_v1 = vmul.f32 %v186_v0, %v186_v0  ;;  %v310_v12 = vld [vmem:[%s628_s1] ss:$0 sm:$0xff]  ;;  %s232_s11 = sshll.u32 %s185_s10, 4  ;;  %s230_s20 = scalar_lea.hbm %s630_s3, %s313_s8  ;;  %s233_s11 = int_to_ptr.vmem [resolvable:$true] %s232_s11 }
  0x36   : > { %v311_v14 = vld [vmem:[%s629_s2] ss:$0 sm:$0xff]  ;;  %s219_s22 = scalar_lea.sflag [#allocation4], %s578_s29  ;;  %s392_s26 = scalar_lea.vmem %s233_s11, 128 }
  0x37   : > { %p393_p11 = scmp.ne.s32.totalorder %s233_s11, %s392_s26  ;;  %p641_p12 = scmp.ne.s32.totalorder %s635_s24, 0 }
  0x38   : > { %s459_s27 = smov [#allocation5]  }
  0x39   : > { %190 = vadd.xlane.f32.xlu0 %v189_v1  ;;  %p394_p13 = pnand %p393_p11, %p641_p12  ;;  %s396_s28 = sshll.u32 %s459_s27, 4  ;;  %s397_s28 = int_to_ptr.vmem [resolvable:$false] %s396_s28 }
  0x3a   : > { %s398_s16 = scalar_lea.vmem %s397_s28, 256  ;;  %p399_p3 = scmp.lt.s32.totalorder %s233_s11, %s397_s28 }
  0x3b   : > { %p395_p1 = pneg %p394_p13  ;;  %p400_p5 = scmp.lt.s32.totalorder %s398_s16, %s392_s26 }
  0x3d   : > { %p401_p8 = por %p400_p5, %p399_p3 }
  0x3f   : > { %p402_p10 = pnand %p401_p8, %p395_p1 }
  0xbe   : > { %v188_v2 = vpop.xlane.xlu0 %187 }
  0xbf   : > { %v192_v3 = vmul.f32 0.0078125, %v188_v2 }
  0xc1   : > { %v193_v4 = vmul.f32 %v192_v3, %v188_v2  ;;  %v199_v10 = vsub.f32 %v186_v0, %v192_v3 }
  0xc2   : > { %v191_v5 = vpop.xlane.xlu0 %190 }
  0xc3   : > { %v194_v6 = vsub.f32 %v191_v5, %v193_v4 }
  0xc5   : > { %v195_v7 = vmul.f32 0.007874016, %v194_v6 }
  0xc7   : > { %v196_v8 = vmax.f32 %v195_v7, 0.0 }
  0xc9   : > { %v197_v9 = vadd.f32 1e-05, %v196_v8 }
  0xcb   : > { %362 = vrsqrt.f32 %v197_v9 }
  0xd8   : > { %v363_v11 = vpop.eup %362 }
  0xd9   : > { %v200_v13 = vmul.f32 %v363_v11, %v199_v10 }
  0xdb   : > { %v208_v15 = vmul.f32 %v310_v12, %v200_v13 }
  0xdd   : > { %v216_v16 = vadd.f32 %v311_v14, %v208_v15 }
  0xdf   : > { %217 = vst [vmem:[%s185_s10] sm:$0xff] %v216_v16 }
  0xe0   : > { %405 = shalt.err (!%p402_p10)
}
  0xe1   : > { %s406_s30 = scalar_lea.hbm %s230_s20, 128  ;;  %s410_s9 = scalar_lea.hbm %s630_s3, 256 }
  0xe2   : > { %p407_p2 = scmp.ne.s32.totalorder %s230_s20, %s406_s30  ;;  %p411_p7 = scmp.lt.s32.totalorder %s230_s20, %s630_s3 }
  0xe3   : > { %p412_p0 = scmp.lt.s32.totalorder %s410_s9, %s406_s30 }
  0xe4   : > { %p408_p4 = pnand %p407_p2, %p641_p12 }
  0xe5   : > { %p413_p6 = por %p412_p0, %p411_p7 }
  0xe6   : > { %p409_p9 = pneg %p408_p4 }
  0xe8   : > { %p414_p11 = pnand %p413_p6, %p409_p9 }
  0xea   : > { %417 = shalt.err (!%p414_p11)
}
  0xeb   : > { %318 = dma.vmem_to_hbm [thread:$0]  (%p641_p12), %s233_s11, 128, %s230_s20, %s219_s22  }
  0xec PF: > { %s244_s6 = sand.u32 1, %s444_s12   ;;  %p642_p13 = scmp.ne.s32.totalorder %s636_s25, 0 }
  0xed   : > { %p643_p1 = scmp.ge.s32.totalorder %s456_s15, 2  ;;  %s245_s7 = scalar_lea.sflag [#allocation4], %s244_s6 }
  0xef   : > { %p325_p3 = pnand %p643_p1, %p642_p13 }
  0xf1   : > { %p326_p5 = pneg %p325_p3 }
  0xf3   : > { %439 = dma.done.wait (%p326_p5), %s245_s7, 128  }
  0xf4   : > { %441 = vsyncadd (%p326_p5), %s245_s7, 4294967168  ;;  %p16_p8 = scmp.ge.s32.totalorder %s505_s18, 4   ;;  %s644_s12 = smov %s448_s13 }
  0xf5   : > { %s645_s13 = smov %s452_s14  ;;  %s646_s14 = smov %s517_s21 }
  0xf6   : > { %s647_s15 = smov %s505_s18  ;;  %18 = sbr.rel (!%p16_p8) target bundleno = 5 (0x5), region = 77 }
  0xfb   :  { %250 = vsyncpa [#allocation3], 1 }
  0xfc   :  { %252 = vsyncpa [#allocation3 + $0x1], 1 }
  0xfd   :  { %253 = vsyncpa [#allocation4], 1 }
  0xfe   :  { %255 = vsyncpa [#allocation4 + $0x1], 1 }

</bundles_post_ra>
